<compile_context>
chip_gen: v6e
topology: v6e:2x2x1
jax: 0.10.0
libtpu: 0.0.40
codegen_flags: <defaults>
</compile_context>

<pallas_src>
import functools

import jax
import jax.numpy as jnp
from jax.experimental import pallas as pl
from jax.experimental.pallas import tpu as pltpu


def _round_up(x, m):
    return (x + m - 1) // m * m


def _tpu_vmem_capacity_and_gen():
    """Best-effort (capacity_bytes, generation) for the attached TPU."""
    kind = ""
    try:
        kind = jax.devices()[0].device_kind.lower()
    except Exception:  # no accelerator info: fall through to defaults
        kind = ""
    if "v5" in kind:
        gen = 5
    elif "v6" in kind:
        gen = 6
    elif "7x" in kind or "v7" in kind:
        gen = 7
    elif "v4" in kind:
        gen = 4
    else:
        gen = None

    cap = None
    if hasattr(pltpu, "get_tpu_info"):
        try:
            cap = getattr(pltpu.get_tpu_info(), "vmem_capacity_bytes", None)
        except Exception:  # hardware query unavailable; use table below
            cap = None
    if cap is None:
        cap = (64 << 20) if gen == 7 else (128 << 20)
    return int(cap), gen


def _epilogue(y, consts, *, eps, use_activation, tanh_bf16, out_dtype):
    """bias + tanh + (eval-mode dropout = identity) + LayerNorm, all in f32."""
    bias = consts[0:1, :]
    gamma = consts[1:2, :]
    beta = consts[2:3, :]

    y = y + bias
    if use_activation:
        if tanh_bf16:
            # v6e/v7x have a bf16 EUP; tanh is the saturating slot at small d_in.
            y = jnp.tanh(y.astype(jnp.bfloat16)).astype(jnp.float32)
        else:
            y = jnp.tanh(y)

    # Dropout: module evaluated in inference mode -> identity.
    # TODO(synk): training-mode dropout would need pltpu.prng_seed +
    # pltpu.prng_random_bits masking; not emitted here.

    # LayerNorm over features. Both reductions depend only on y so they issue
    # back-to-back on the XLU (var = E[y^2] - mean^2).
    inv_n = jnp.float32(1.0 / y.shape[-1])
    s1 = jnp.sum(y, axis=-1, keepdims=True)
    s2 = jnp.sum(y * y, axis=-1, keepdims=True)
    mean = s1 * inv_n
    var = s2 * inv_n - mean * mean
    rstd = jax.lax.rsqrt(var + eps)
    return ((y - mean) * rstd * gamma + beta).astype(out_dtype)


def fc_resident_kernel(x_ref, w_ref, c_ref, o_ref, *, eps, use_activation,
                       compute_dtype, tanh_bf16):
    # x_ref: (tm, d_in); w_ref: (d_in, d_out) resident; c_ref: (3, d_out) f32.
    x = x_ref[...]
    if compute_dtype is not None:
        x = x.astype(compute_dtype)
    y = jnp.dot(x, w_ref[...], preferred_element_type=jnp.float32)
    o_ref[...] = _epilogue(y, c_ref[...], eps=eps, use_activation=use_activation,
                           tanh_bf16=tanh_bf16, out_dtype=o_ref.dtype)


def fc_ksplit_kernel(x_ref, w_ref, c_ref, o_ref, acc_ref, *, eps, use_activation,
                     compute_dtype, tanh_bf16):
    # Grid = (row tiles, K tiles); reduction axis last ("arbitrary").
    k = pl.program_id(1)

    @pl.when(k == 0)
    def _():
        acc_ref[...] = jnp.zeros_like(acc_ref)

    x = x_ref[...]
    if compute_dtype is not None:
        x = x.astype(compute_dtype)
    acc_ref[...] += jnp.dot(x, w_ref[...], preferred_element_type=jnp.float32)

    @pl.when(k == pl.num_programs(1) - 1)
    def _():
        o_ref[...] = _epilogue(acc_ref[...], c_ref[...], eps=eps,
                               use_activation=use_activation,
                               tanh_bf16=tanh_bf16, out_dtype=o_ref.dtype)


def fc_layer_forward(x, weight_t, bias, gamma, beta, *,
                     use_activation=True, eps=1e-5,
                     allow_bf16=False, force_k_split=False,
                     tm=None, tk_max=1024):
    """x: (..., d_in). weight_t: (d_in, d_out) (transpose of nn.Linear.weight)."""
    orig_shape = x.shape
    d_in = orig_shape[-1]
    d_out = weight_t.shape[1]

    cap, gen = _tpu_vmem_capacity_and_gen()
    # Generation-aware scoped-VMEM ceiling: leave headroom for Mosaic internal
    # scratch on v7x; use most of the 128 MiB on v5e/v6e.
    vmem_cap = min(cap, (56 << 20) if gen == 7 else (100 << 20))
    budget = vmem_cap - (4 << 20)

    # bf16 MXU operands for f32 inputs (f32 accumulation kept).
    compute_dtype = None
    if allow_bf16 and x.dtype == jnp.float32:
        compute_dtype = jnp.bfloat16
        if weight_t.dtype == jnp.float32:
            weight_t = weight_t.astype(jnp.bfloat16)
    op_is_bf16 = (compute_dtype == jnp.bfloat16) or (x.dtype == jnp.bfloat16)
    tanh_bf16 = bool(use_activation and op_is_bf16 and gen in (6, 7))

    x2d = x.reshape(-1, d_in)
    m = x2d.shape[0]

    # Row tiling: pad M only to the sublane multiple; pick tm as a divisor of
    # the padded M so the common case has no pad / no output-slice copy.
    sub = 16 if x.dtype == jnp.bfloat16 else 8
    tm_desired = tm if tm is not None else (256 if gen == 7 else 512)
    tm_desired = max(sub, _round_up(int(tm_desired), sub))

    m_pad = _round_up(m, sub)
    if m_pad <= tm_desired:
        tm_eff = m_pad
    else:
        tm_eff = sub
        for cand in range(tm_desired, sub - 1, -sub):
            if m_pad % cand == 0:
                tm_eff = cand
                break
        if tm_eff < 64 and m_pad > 4 * tm_desired:
            # No usable divisor (e.g. 8*large-prime): accept a one-tile pad.
            tm_eff = tm_desired
            m_pad = _round_up(m, tm_eff)

    if m_pad != m:
        x2d = jnp.pad(x2d, ((0, m_pad - m), (0, 0)))

    # Pack bias/gamma/beta into a single (3, d_out) f32 constant.
    consts = jnp.stack(
        [bias.reshape(d_out).astype(jnp.float32),
         gamma.reshape(d_out).astype(jnp.float32),
         beta.reshape(d_out).astype(jnp.float32)], axis=0)

    x_bytes = x2d.dtype.itemsize
    w_el = weight_t.dtype.itemsize
    out_bytes = jnp.dtype(x.dtype).itemsize
    w_total = d_in * d_out * w_el

    def resident_need(tm_):
        return (2 * tm_ * d_in * x_bytes          # x tiles (double-buffered)
                + 2 * tm_ * d_out * out_bytes     # out tiles
                + 2 * w_total                     # resident weight (2 bufs)
                + 2 * 8 * d_out * 4               # packed consts (sublane-padded)
                + 4 * tm_ * d_out * 4)            # f32 epilogue intermediates

    use_ksplit = force_k_split or (resident_need(tm_eff) > budget)

    cost = pl.CostEstimate(
        flops=2 * m_pad * d_in * d_out + 10 * m_pad * d_out,
        transcendentals=(m_pad * d_out if use_activation else 0) + m_pad,
        bytes_accessed=(m_pad * d_in * x_bytes + w_total
                        + m_pad * d_out * out_bytes + 3 * d_out * 4),
    )

    if not use_ksplit:
        kernel = functools.partial(fc_resident_kernel, eps=eps,
                                   use_activation=use_activation,
                                   compute_dtype=compute_dtype,
                                   tanh_bf16=tanh_bf16)
        vmem_limit = int(min(vmem_cap, max(resident_need(tm_eff) + (2 << 20),
                                           32 << 20)))
        out2d = pl.pallas_call(
            kernel,
            out_shape=jax.ShapeDtypeStruct((m_pad, d_out), x.dtype),
            grid_spec=pltpu.PrefetchScalarGridSpec(
                num_scalar_prefetch=0,
                grid=(m_pad // tm_eff,),
                in_specs=[
                    pl.BlockSpec((tm_eff, d_in), lambda i: (i, 0)),   # x row tile
                    pl.BlockSpec((d_in, d_out), lambda i: (0, 0)),    # full weight
                    pl.BlockSpec((3, d_out), lambda i: (0, 0)),       # bias/gamma/beta
                ],
                out_specs=pl.BlockSpec((tm_eff, d_out), lambda i: (i, 0)),
            ),
            compiler_params=pltpu.CompilerParams(
                dimension_semantics=("parallel",),
                vmem_limit_bytes=vmem_limit,
            ),
            cost_estimate=cost,
        )(x2d, weight_t, consts)
    else:
        # K-split: weight too large to stay resident (or forced). Pad d_in to a
        # multiple of 128 (zero padding contributes nothing to the dot).
        d_in_pad = _round_up(d_in, 128)
        tk = 128
        for cand in range(min(int(tk_max), d_in_pad), 127, -128):
            if d_in_pad % cand != 0:
                continue
            need = (2 * tm_eff * cand * x_bytes
                    + 2 * cand * d_out * w_el
                    + 2 * tm_eff * d_out * out_bytes
                    + tm_eff * d_out * 4          # f32 accumulator
                    + 2 * 8 * d_out * 4
                    + 4 * tm_eff * d_out * 4)
            if need <= budget:
                tk = cand
                break
        if d_in_pad != d_in:
            x2d = jnp.pad(x2d, ((0, 0), (0, d_in_pad - d_in)))
            weight_t = jnp.pad(weight_t, ((0, d_in_pad - d_in), (0, 0)))
        n_k = d_in_pad // tk

        ksplit_need = (2 * tm_eff * tk * x_bytes + 2 * tk * d_out * w_el
                       + 2 * tm_eff * d_out * out_bytes + tm_eff * d_out * 4
                       + 2 * 8 * d_out * 4 + 4 * tm_eff * d_out * 4)
        vmem_limit = int(min(vmem_cap, max(ksplit_need + (4 << 20), 32 << 20)))

        kernel = functools.partial(fc_ksplit_kernel, eps=eps,
                                   use_activation=use_activation,
                                   compute_dtype=compute_dtype,
                                   tanh_bf16=tanh_bf16)
        out2d = pl.pallas_call(
            kernel,
            out_shape=jax.ShapeDtypeStruct((m_pad, d_out), x.dtype),
            grid_spec=pltpu.PrefetchScalarGridSpec(
                num_scalar_prefetch=0,
                grid=(m_pad // tm_eff, n_k),
                in_specs=[
                    pl.BlockSpec((tm_eff, tk), lambda i, k: (i, k)),  # x (row, K) tile
                    pl.BlockSpec((tk, d_out), lambda i, k: (k, 0)),   # weight K tile
                    pl.BlockSpec((3, d_out), lambda i, k: (0, 0)),    # bias/gamma/beta
                ],
                out_specs=pl.BlockSpec((tm_eff, d_out), lambda i, k: (i, 0)),
                scratch_shapes=[pltpu.VMEM((tm_eff, d_out), jnp.float32)],
            ),
            compiler_params=pltpu.CompilerParams(
                dimension_semantics=("parallel", "arbitrary"),
                vmem_limit_bytes=vmem_limit,
            ),
            cost_estimate=cost,
        )(x2d, weight_t, consts)

    if m_pad != m:
        out2d = out2d[:m]
    return out2d.reshape(*orig_shape[:-1], d_out)


def _ref_forward(x, weight_t, bias, gamma, beta, use_activation=True, eps=1e-5):
    y = x @ weight_t + bias
    if use_activation:
        y = jnp.tanh(y)
    mu = y.mean(-1, keepdims=True)
    var = ((y - mu) ** 2).mean(-1, keepdims=True)
    return (y - mu) / jnp.sqrt(var + eps) * gamma + beta


def _make_params(key, d_in, d_out):
    kw, kb, kg, kbt = jax.random.split(key, 4)
    bound = 1.0 / (d_in ** 0.5)
    weight_t = jax.random.uniform(kw, (d_in, d_out), jnp.float32, -bound, bound)
    bias = jax.random.uniform(kb, (d_out,), jnp.float32, -bound, bound)
    gamma = jnp.ones((d_out,), jnp.float32) + 0.01 * jax.random.normal(kg, (d_out,))
    beta = 0.01 * jax.random.normal(kbt, (d_out,))
    return weight_t, bias, gamma, beta


if __name__ == "__main__":
    key = jax.random.PRNGKey(0)
    k1, k2, k3, k4 = jax.random.split(key, 4)

    # Test 1: resident-weight path, f32 end-to-end (tight tolerance).
    batch, seq, input_dim, output_dim = 2, 8, 128, 128
    x = jax.random.normal(k1, (batch, seq, input_dim), dtype=jnp.float32)
    w_t, b, g, bt = _make_params(k2, input_dim, output_dim)
    out = jax.block_until_ready(fc_layer_forward(x, w_t, b, g, bt))
    ref = _ref_forward(x, w_t, b, g, bt)
    assert out.shape == ref.shape, (out.shape, ref.shape)
    err = float(jnp.max(jnp.abs(out - ref)))
    assert jnp.allclose(out, ref, atol=1e-4, rtol=1e-4), f"resident path mismatch {err}"

    # Test 2: forced K-split path (2 K-tiles), ragged M (pad+slice exercised).
    b2s, s2s, d_in2, d_out2 = 3, 5, 256, 128
    x2 = jax.random.normal(k3, (b2s, s2s, d_in2), dtype=jnp.float32)
    w_t2, b2, g2, bt2 = _make_params(k4, d_in2, d_out2)
    out2 = jax.block_until_ready(
        fc_layer_forward(x2, w_t2, b2, g2, bt2, force_k_split=True, tk_max=128))
    ref2 = _ref_forward(x2, w_t2, b2, g2, bt2)
    err2 = float(jnp.max(jnp.abs(out2 - ref2)))
    assert out2.shape == ref2.shape, (out2.shape, ref2.shape)
    assert jnp.allclose(out2, ref2, atol=1e-4, rtol=1e-4), f"k-split path mismatch {err2}"

    # Test 3: bf16 MXU operands (f32 accumulation), loose tolerance vs f32 ref.
    out3 = jax.block_until_ready(fc_layer_forward(x, w_t, b, g, bt, allow_bf16=True))
    err3 = float(jnp.max(jnp.abs(out3 - ref)))
    assert jnp.allclose(out3, ref, atol=5e-2, rtol=5e-2), f"bf16 path mismatch {err3}"

    print("KERNEL_OK")
</pallas_src>

<mosaic_0001>
module attributes {stable_mosaic.version = 11 : i64} {
  func.func @fc_resident_kernel(%arg0: i32, %arg1: memref<16x128xf32, #tpu.memory_space<vmem>>, %arg2: memref<128x128xf32, #tpu.memory_space<vmem>>, %arg3: memref<3x128xf32, #tpu.memory_space<vmem>>, %arg4: memref<16x128xf32, #tpu.memory_space<vmem>>) attributes {dimension_semantics = [#tpu.dimension_semantics<parallel>], iteration_bounds = array<i64: 1>, scalar_prefetch = 0 : i64, scratch_operands = 0 : i64, tpu.core_type = #tpu.core_type<tc>, window_params = [{transform_indices = @transform_0, window_bounds = array<i64: 16, 128>}, {pipeline_mode = #tpu.pipeline_mode<synchronous>, transform_indices = @transform_1, window_bounds = array<i64: 128, 128>}, {pipeline_mode = #tpu.pipeline_mode<synchronous>, transform_indices = @transform_2, window_bounds = array<i64: 3, 128>}, {transform_indices = @transform_3, window_bounds = array<i64: 16, 128>}]} {
    %c0 = arith.constant 0 : index
    %c0_0 = arith.constant 0 : index
    %0 = vector.load %arg1[%c0, %c0_0] : memref<16x128xf32, #tpu.memory_space<vmem>>, vector<16x128xf32>
    %c0_1 = arith.constant 0 : index
    %c0_2 = arith.constant 0 : index
    %1 = vector.load %arg2[%c0_1, %c0_2] : memref<128x128xf32, #tpu.memory_space<vmem>>, vector<128x128xf32>
    %cst = arith.constant dense<0.000000e+00> : vector<16x128xf32>
    %2 = tpu.matmul %0, %1, %cst {dimension_numbers = #tpu.dot_dimension_numbers<[1], [0], [0], [1], [0, 0, 1, 1], [], []>} : vector<16x128xf32>, vector<128x128xf32>, vector<16x128xf32> -> vector<16x128xf32>
    %c0_3 = arith.constant 0 : index
    %c0_4 = arith.constant 0 : index
    %3 = vector.load %arg3[%c0_3, %c0_4] : memref<3x128xf32, #tpu.memory_space<vmem>>, vector<3x128xf32>
    %4 = vector.extract_strided_slice %3 {offsets = [0, 0], sizes = [1, 128], strides = [1, 1]} : vector<3x128xf32> to vector<1x128xf32>
    %5 = vector.extract_strided_slice %3 {offsets = [1, 0], sizes = [1, 128], strides = [1, 1]} : vector<3x128xf32> to vector<1x128xf32>
    %6 = vector.extract_strided_slice %3 {offsets = [2, 0], sizes = [1, 128], strides = [1, 1]} : vector<3x128xf32> to vector<1x128xf32>
    %7 = vector.broadcast %4 : vector<1x128xf32> to vector<16x128xf32>
    %8 = arith.addf %2, %7 : vector<16x128xf32>
    %9 = math.tanh %8 : vector<16x128xf32>
    %cst_5 = arith.constant dense<0.000000e+00> : vector<16xf32>
    %10 = vector.multi_reduction <add>, %9, %cst_5 [1] : vector<16x128xf32> to vector<16xf32>
    %11 = vector.shape_cast %10 : vector<16xf32> to vector<16x1xf32>
    %12 = arith.mulf %9, %9 : vector<16x128xf32>
    %cst_6 = arith.constant dense<0.000000e+00> : vector<16xf32>
    %13 = vector.multi_reduction <add>, %12, %cst_6 [1] : vector<16x128xf32> to vector<16xf32>
    %14 = vector.shape_cast %13 : vector<16xf32> to vector<16x1xf32>
    %cst_7 = arith.constant 7.812500e-03 : f32
    %15 = vector.broadcast %cst_7 : f32 to vector<16x1xf32>
    %16 = arith.mulf %11, %15 : vector<16x1xf32>
    %cst_8 = arith.constant 7.812500e-03 : f32
    %17 = vector.broadcast %cst_8 : f32 to vector<16x1xf32>
    %18 = arith.mulf %14, %17 : vector<16x1xf32>
    %19 = arith.mulf %16, %16 : vector<16x1xf32>
    %20 = arith.subf %18, %19 : vector<16x1xf32>
    %cst_9 = arith.constant 9.99999974E-6 : f32
    %21 = vector.broadcast %cst_9 : f32 to vector<16x1xf32>
    %22 = arith.addf %20, %21 : vector<16x1xf32>
    %23 = math.rsqrt %22 : vector<16x1xf32>
    %24 = vector.broadcast %16 : vector<16x1xf32> to vector<16x128xf32>
    %25 = arith.subf %9, %24 : vector<16x128xf32>
    %26 = vector.broadcast %23 : vector<16x1xf32> to vector<16x128xf32>
    %27 = arith.mulf %25, %26 : vector<16x128xf32>
    %28 = vector.broadcast %5 : vector<1x128xf32> to vector<16x128xf32>
    %29 = arith.mulf %27, %28 : vector<16x128xf32>
    %30 = vector.broadcast %6 : vector<1x128xf32> to vector<16x128xf32>
    %31 = arith.addf %29, %30 : vector<16x128xf32>
    %c0_10 = arith.constant 0 : index
    %c0_11 = arith.constant 0 : index
    %32 = vector.load %arg4[%c0_10, %c0_11] : memref<16x128xf32, #tpu.memory_space<vmem>>, vector<16x128xf32>
    tpu.vector_store %arg4[%c0_10, %c0_11], %31 {strides = array<i32>} : memref<16x128xf32, #tpu.memory_space<vmem>>, vector<16x128xf32>,
    return
  }
  func.func @transform_0(%arg0: i32) -> (i32, i32) {
    %c0_i32 = arith.constant 0 : i32
    %c0_i32_0 = arith.constant 0 : i32
    return %arg0, %c0_i32 : i32, i32
  }
  func.func @transform_1(%arg0: i32) -> (i32, i32) {
    %c0_i32 = arith.constant 0 : i32
    %c0_i32_0 = arith.constant 0 : i32
    %c0_i32_1 = arith.constant 0 : i32
    return %c0_i32, %c0_i32_0 : i32, i32
  }
  func.func @transform_2(%arg0: i32) -> (i32, i32) {
    %c0_i32 = arith.constant 0 : i32
    %c0_i32_0 = arith.constant 0 : i32
    %c0_i32_1 = arith.constant 0 : i32
    return %c0_i32, %c0_i32_0 : i32, i32
  }
  func.func @transform_3(%arg0: i32) -> (i32, i32) {
    %c0_i32 = arith.constant 0 : i32
    %c0_i32_0 = arith.constant 0 : i32
    return %arg0, %c0_i32 : i32, i32
  }
}

</mosaic_0001>

<bundles_post_ra>
// kernel: tpu_custom_call.1
= control target key start
LH: loop header
LB: loop body
LE: loop exit
PB: predicated region body
PF: predicated region fallthrough
CT: control target
= control target key end

     0   :  { %8 = vsyncpa [#allocation3], 0  ;;  %s412_s0 = inlined_call_operand.hbm [shape: f32[16,128], index: 0, kind: input, shape index: {}]   ;;  %s413_s1 = inlined_call_operand.hbm [shape: f32[128,128], index: 1, kind: input, shape index: {}]   ;;  %s414_s2 = inlined_call_operand.hbm [shape: f32[3,128], index: 2, kind: input, shape index: {}]   ;;  %s415_s3 = inlined_call_operand.hbm [shape: f32[16,128], index: 3, kind: output, shape index: {}]  }
   0x1   :  { %9 = vsyncpa [#allocation6], 0 }
   0x2   :  { %10 = vsyncpa [#allocation4], 0  ;;  %s365_s12 = smov [#allocation5]   ;;  %s366_s14 = smov [#allocation2]  }
   0x3   :  { %s28_s13 = sshll.u32 %s365_s12, 4  ;;  %s16_s15 = sshll.u32 %s366_s14, 4  ;;  %s29_s13 = int_to_ptr.vmem [resolvable:$true] %s28_s13  ;;  %s17_s15 = int_to_ptr.vmem [resolvable:$true] %s16_s15 }
   0x4   :  { %s287_s16 = scalar_lea.vmem %s29_s13, 2048  ;;  %p292_p1 = scmp.lt.s32.totalorder %s29_s13, %s29_s13 }
   0x5   :  { %p288_p0 = scmp.ne.s32.totalorder %s29_s13, %s287_s16  ;;  %p293_p2 = scmp.lt.s32.totalorder %s287_s16, %s287_s16 }
   0x7   :  { %p294_p3 = por %p293_p2, %p292_p1 }
   0x9   :  { %p295_p4 = pnand %p294_p3, %p288_p0 }
   0xb   :  { %298 = shalt.err (!%p295_p4)
}
   0xc   :  { %s367_s17 = smov 128   ;;  %s368_s18 = smov 8  }
   0xd   :  { %34 = dma.hbm_to_vmem [thread:$0]  %s413_s1, 2048, %s29_s13, [#allocation6], %s367_s17, %s367_s17, %s368_s18  }
   0xe   :  { %s307_s21 = scalar_lea.vmem %s17_s15, 256  ;;  %p312_p6 = scmp.lt.s32.totalorder %s17_s15, %s17_s15 }
   0xf   :  { %p308_p5 = scmp.ne.s32.totalorder %s17_s15, %s307_s21  ;;  %p313_p7 = scmp.lt.s32.totalorder %s307_s21, %s307_s21 }
  0x11   :  { %p314_p8 = por %p313_p7, %p312_p6 }
  0x13   :  { %p315_p9 = pnand %p314_p8, %p308_p5 }
  0x15   :  { %318 = shalt.err (!%p315_p9)
}
  0x16   :  { %22 = dma.hbm_to_vmem [thread:$0]  %s412_s0, 256, %s17_s15, [#allocation3], %s367_s17, %s367_s17, %s368_s18  }
  0x17   :  { %s369_s24 = smov [#allocation7]  }
  0x18   :  { %s41_s25 = sshll.u32 %s369_s24, 4  ;;  %s42_s25 = int_to_ptr.vmem [resolvable:$true] %s41_s25 }
  0x19   :  { %s327_s26 = scalar_lea.vmem %s42_s25, 64  ;;  %p332_p11 = scmp.lt.s32.totalorder %s42_s25, %s42_s25 }
  0x1a   :  { %p328_p10 = scmp.ne.s32.totalorder %s42_s25, %s327_s26  ;;  %p333_p12 = scmp.lt.s32.totalorder %s327_s26, %s327_s26 }
  0x1c   :  { %p334_p13 = por %p333_p12, %p332_p11 }
  0x1e   :  { %p335_p0 = pnand %p334_p13, %p328_p10 }
  0x20   :  { %338 = shalt.err (!%p335_p0)
}
  0x21   :  { %44 = dma.hbm_to_vmem [thread:$0]  %s414_s2, 64, %s42_s25, [#allocation6]  }
  0x22   :  { %359 = dma.done.wait [#allocation3], 256  }
  0x23   :  { %360 = vsyncadd [#allocation3], 4294967040 }
  0x24   :  { %361 = dma.done.wait [#allocation6], 2112  }
  0x25   :  { %362 = vsyncadd [#allocation6], 4294965184  ;;  %v71_v0 = vld [vmem:[#allocation5 + $0x78] sm:$0xff]  ;;  %v70_v1 = vld [vmem:[#allocation5 + $0x70] sm:$0xff]  ;;  %v73_v18 = vlaneseq  ;;  %s370_s0 = smov [#allocation8]  }
  0x26   :  { %230 = vmatprep.subr.mxu0 %v71_v0  ;;  %v69_v2 = vld [vmem:[#allocation5 + $0x68] sm:$0xff]  ;;  %v68_v3 = vld [vmem:[#allocation5 + $0x60] sm:$0xff]  ;;  %v54_v4 = vld [vmem:[#allocation2] sm:$0xff]  ;;  %s199_s2 = sshll.u32 %s370_s0, 4  ;;  %s200_s2 = int_to_ptr.vmem [resolvable:$true] %s199_s2 }
  0x27   :  { %231 = vmatpush3.msra.mxu0 %v71_v0  ;;  %v67_v5 = vld [vmem:[#allocation5 + $0x58] sm:$0xff]  ;;  %262 = vmatprep.mubr.f32.mxu0 %v54_v4  ;;  %v66_v6 = vld [vmem:[#allocation5 + $0x50] sm:$0xff]  ;;  %v65_v7 = vld [vmem:[#allocation5 + $0x48] sm:$0xff]  ;;  %v74_v19 = vshrl.u32 %v73_v18, 7  ;;  %s339_s28 = scalar_lea.vmem %s200_s2, 256  ;;  %p344_p2 = scmp.lt.s32.totalorder %s200_s2, %s200_s2 }
  0x28   :  { %232 = vmatprep.subr.mxu0 %v70_v1  ;;  %v64_v8 = vld [vmem:[#allocation5 + $0x40] sm:$0xff]  ;;  %v63_v9 = vld [vmem:[#allocation5 + $0x38] sm:$0xff]  ;;  %v62_v10 = vld [vmem:[#allocation5 + $0x30] sm:$0xff]  ;;  %p340_p1 = scmp.ne.s32.totalorder %s200_s2, %s339_s28  ;;  %p345_p3 = scmp.lt.s32.totalorder %s339_s28, %s339_s28 }
  0x29   :  { %233 = vmatpush3.msra.mxu0 %v70_v1  ;;  %v61_v11 = vld [vmem:[#allocation5 + $0x28] sm:$0xff]  ;;  %v60_v12 = vld [vmem:[#allocation5 + $0x20] sm:$0xff]  ;;  %v59_v13 = vld [vmem:[#allocation5 + $0x18] sm:$0xff]  ;;  %v75_v20 = vsub.s32 0, %v74_v19  ;;  %v182_v45 = vsub.s32 1, %v74_v19  ;;  %v188_v46 = vsub.s32 2, %v74_v19 }
  0x2a   :  { %234 = vmatprep.subr.mxu0 %v69_v2  ;;  %v58_v14 = vld [vmem:[#allocation5 + $0x10] sm:$0xff]  ;;  %v57_v15 = vld [vmem:[#allocation5 + $0x8] sm:$0xff]  ;;  %v56_v16 = vld [vmem:[#allocation5] sm:$0xff]  ;;  %p346_p4 = por %p345_p3, %p344_p2 }
  0x2b   :  { %235 = vmatpush3.msra.mxu0 %v69_v2  ;;  %v55_v17 = vld [vmem:[#allocation2 + $0x8] sm:$0xff]  ;;  %v72_v21 = vld [vmem:[#allocation7] sm:$0x7] }
  0x2c   :  { %236 = vmatprep.subr.mxu0 %v68_v3  ;;  %v76_v22 = vrot.slane %v72_v21, %v75_v20  ;;  %v183_v47 = vrot.slane %v72_v21, %v182_v45  ;;  %v189_v50 = vrot.slane %v72_v21, %v188_v46  ;;  %p347_p5 = pnand %p346_p4, %p340_p1 }
  0x2d   :  { %237 = vmatpush3.msra.mxu0 %v68_v3 }
  0x2e   :  { %238 = vmatprep.subr.mxu0 %v67_v5 }
  0x2f   :  { %239 = vmatpush3.msra.mxu0 %v67_v5 }
  0x30   :  { %240 = vmatprep.subr.mxu0 %v66_v6 }
  0x31   :  { %241 = vmatpush3.msra.mxu0 %v66_v6 }
  0x32   :  { %242 = vmatprep.subr.mxu0 %v65_v7 }
  0x33   :  { %243 = vmatpush3.msra.mxu0 %v65_v7 }
  0x34   :  { %244 = vmatprep.subr.mxu0 %v64_v8 }
  0x35   :  { %245 = vmatpush3.msra.mxu0 %v64_v8 }
  0x36   :  { %246 = vmatprep.subr.mxu0 %v63_v9 }
  0x37   :  { %247 = vmatpush3.msra.mxu0 %v63_v9 }
  0x38   :  { %248 = vmatprep.subr.mxu0 %v62_v10 }
  0x39   :  { %249 = vmatpush3.msra.mxu0 %v62_v10 }
  0x3a   :  { %250 = vmatprep.subr.mxu0 %v61_v11 }
  0x3b   :  { %251 = vmatpush3.msra.mxu0 %v61_v11 }
  0x3c   :  { %252 = vmatprep.subr.mxu0 %v60_v12 }
  0x3d   :  { %253 = vmatpush3.msra.mxu0 %v60_v12 }
  0x3e   :  { %254 = vmatprep.subr.mxu0 %v59_v13 }
  0x3f   :  { %255 = vmatpush3.msra.mxu0 %v59_v13 }
  0x40   :  { %256 = vmatprep.subr.mxu0 %v58_v14 }
  0x41   :  { %257 = vmatpush3.msra.mxu0 %v58_v14 }
  0x42   :  { %258 = vmatprep.subr.mxu0 %v57_v15 }
  0x43   :  { %259 = vmatpush3.msra.mxu0 %v57_v15 }
  0x44   :  { %260 = vmatprep.subr.mxu0 %v56_v16 }
  0x45   :  { %261 = vmatpush3.msra.mxu0 %v56_v16 }
  0x46   :  { %263 = vmatmul.mubr.f32.vlgmr.msra.gmra.mxu0 %v55_v17 }
 0x106   :  { %v264_v23 = vpop.f32.mrf.mxu0 }
 0x107   :  { %v149_v25 = vadd.f32 %v264_v23, %v76_v22 }
 0x108   :  { %v143_v24 = vpop.f32.mrf.mxu0 }
 0x109   :  { %v144_v26 = vadd.f32 %v143_v24, %v76_v22 }
 0x10b   :  { %271 = vtanh.f32 %v144_v26 }
 0x10c   :  { %273 = vtanh.f32 %v149_v25 }
 0x118   :  { %v272_v27 = vpop.eup %271 }
 0x119   :  { %154 = vadd.xlane.f32.xlu0 %v272_v27  ;;  %v158_v28 = vmul.f32 %v272_v27, %v272_v27  ;;  %v274_v29 = vpop.eup %273 }
 0x11a   :  { %v159_v30 = vmul.f32 %v274_v29, %v274_v29 }
 0x11b   :  { %160 = vadd.xlane.f32.xlu1 %v158_v28 }
 0x11d   :  { %156 = vadd.xlane.f32.xlu0 %v274_v29 }
 0x11f   :  { %162 = vadd.xlane.f32.xlu1 %v159_v30 }
 0x1a2   :  { %v155_v31 = vpop.xlane.xlu0 %154 }
 0x1a3   :  { %v164_v32 = vmul.f32 0.0078125, %v155_v31 }
 0x1a4   :  { %v161_v33 = vpop.xlane.xlu1 %160 }
 0x1a5   :  { %v168_v34 = vmul.f32 %v164_v32, %v164_v32  ;;  %v166_v35 = vmul.f32 0.0078125, %v161_v33  ;;  %v176_v48 = vsub.f32 %v272_v27, %v164_v32 }
 0x1a6   :  { %v157_v36 = vpop.xlane.xlu0 %156 }
 0x1a7   :  { %v170_v37 = vsub.f32 %v166_v35, %v168_v34  ;;  %v165_v38 = vmul.f32 0.0078125, %v157_v36 }
 0x1a8   :  { %v163_v39 = vpop.xlane.xlu1 %162 }
 0x1a9   :  { %v172_v40 = vadd.f32 1e-05, %v170_v37  ;;  %v169_v41 = vmul.f32 %v165_v38, %v165_v38  ;;  %v167_v42 = vmul.f32 0.0078125, %v163_v39  ;;  %v177_v52 = vsub.f32 %v274_v29, %v165_v38 }
 0x1ab   :  { %275 = vrsqrt.f32 %v172_v40  ;;  %v171_v43 = vsub.f32 %v167_v42, %v169_v41 }
 0x1ad   :  { %v173_v44 = vadd.f32 1e-05, %v171_v43 }
 0x1af   :  { %277 = vrsqrt.f32 %v173_v44 }
 0x1b8   :  { %v276_v49 = vpop.eup %275 }
 0x1b9   :  { %v178_v51 = vmul.f32 %v276_v49, %v176_v48 }
 0x1bb   :  { %v184_v53 = vmul.f32 %v183_v47, %v178_v51 }
 0x1bc   :  { %v278_v54 = vpop.eup %277 }
 0x1bd   :  { %v179_v55 = vmul.f32 %v278_v54, %v177_v52  ;;  %v190_v56 = vadd.f32 %v189_v50, %v184_v53 }
 0x1bf   :  { %v185_v57 = vmul.f32 %v183_v47, %v179_v55  ;;  %192 = vst [vmem:[#allocation8] sm:$0xff] %v190_v56 }
 0x1c1   :  { %v191_v58 = vadd.f32 %v189_v50, %v185_v57 }
 0x1c3   :  { %193 = vst [vmem:[#allocation8 + $0x8] sm:$0xff] %v191_v58 }
 0x1c4   :  { %350 = shalt.err (!%p347_p5)
}
 0x1c5   :  { %205 = dma.vmem_to_hbm [thread:$0]  %s200_s2, 256, %s415_s3, [#allocation4], %s367_s17, %s367_s17, %s368_s18  }
 0x1c6   :  { %363 = dma.done.wait [#allocation4], 256  }
 0x1c7   :  { %364 = vsyncadd [#allocation4], 4294967040 }
 0x1c8   :  { %209 = vsyncpa [#allocation3], 1 }
 0x1c9   :  { %210 = vsyncpa [#allocation6], 1 }
 0x1ca   :  { %211 = vsyncpa [#allocation4], 1 }

</bundles_post_ra>
